<compile_context>
chip_gen: v7x
topology: tpu7x:2x2x1
jax: 0.10.0
libtpu: 0.0.40
codegen_flags: <defaults>
</compile_context>

<pallas_src>
import jax
import jax.numpy as jnp
from jax.experimental import pallas as pl
from jax.experimental.pallas import tpu as pltpu


# ----------------------------------------------------------------------------
# Kernel: synthetic "hf_model" classifier head
#   Streaming mean-pool over the sequence (f32 accumulator) + [H, C] head.
#   grid = (N // TN  [parallel],  S // TS  [arbitrary / reduction, innermost]).
# ----------------------------------------------------------------------------
def _classifier_kernel(x_ref, w_ref, b_ref, logits_ref, acc_ref):
    s_idx = pl.program_id(1)

    @pl.when(s_idx == 0)
    def _():
        acc_ref[...] = jnp.zeros_like(acc_ref)

    # Reduce this S-chunk directly into f32.  dtype= on the sum keeps the bf16->f32
    # convert per-vreg inside the reduction (no full f32 copy of the chunk).
    acc_ref[...] += jnp.sum(x_ref[...], axis=1, dtype=jnp.float32)

    @pl.when(s_idx == pl.num_programs(1) - 1)
    def _():
        # 1/S is already folded into w host-side, so acc @ w == mean(x) @ w_orig.
        logits = jnp.dot(acc_ref[...], w_ref[...].astype(jnp.float32),
                         preferred_element_type=jnp.float32)          # [TN, C]
        logits_ref[...] = logits + b_ref[...].astype(jnp.float32)     # b is [1, C]


def _pick_tiles(n, s, h, itemsize, x_buf_budget_bytes=8 << 20, min_n_blocks=2):
    """Pick (TN, TS) tiles for the [N, S, H] input.

    TS is chosen first (longest contiguous DMA runs, fewest reduction steps),
    aligned to the dtype's sublane packing; TN second, capped so the N axis splits
    into >= `min_n_blocks` blocks (keeps both v7x TensorCores streaming; harmless
    on single-TC v5e/v6e).  Falls back to the full dim when no clean divisor exists.
    """
    pack = max(8, 32 // max(1, itemsize))   # 8 for f32, 16 for bf16, 32 for int8/fp8

    def _divisor_tile(dim, cap, step):
        if cap >= dim:
            return dim                       # full dim is always legal
        t = max(step, (cap // step) * step)
        while t >= step and dim % t:
            t -= step
        return t if (t >= step and dim % t == 0) else dim   # fallback: full dim

    # 1) TS first, budgeting with the minimum TN (8) so TS gets the largest share.
    ts_cap = max(pack, x_buf_budget_bytes // max(1, 8 * h * itemsize))
    ts = _divisor_tile(s, ts_cap, pack)

    # 2) TN second: leftover budget, capped for megacore splitting of the N axis.
    tn_cap = x_buf_budget_bytes // max(1, ts * h * itemsize)
    if min_n_blocks > 1 and n >= 8 * min_n_blocks:
        tn_cap = min(tn_cap, max(8, (n // min_n_blocks) // 8 * 8))
    tn = _divisor_tile(n, max(8, tn_cap), 8)
    return tn, ts


def classifier_head(x, w, b, *, tn=None, ts=None, buffer_count=2):
    n, s, h = x.shape
    c = w.shape[1]
    auto_tn, auto_ts = _pick_tiles(n, s, h, x.dtype.itemsize)
    tn = auto_tn if tn is None else tn
    ts = auto_ts if ts is None else ts
    assert n % tn == 0 and s % ts == 0, (n, s, tn, ts)

    # Fold the mean's 1/S into the tiny head weights host-side (removes the
    # `acc * inv_s` (TN, H) f32 pass from the kernel finalize).
    w_scaled = w.astype(jnp.float32) * (1.0 / float(s))
    b32 = b.astype(jnp.float32)

    # Explicit VMEM budget: `buffer_count` x-tiles in flight + resident w/b/logits/acc,
    # with 2x headroom, capped well under v7x's 64 MiB physical VMEM per TC.
    x_block_bytes = tn * ts * h * x.dtype.itemsize
    resident = (h * c + c) * 4 + 2 * tn * c * 4 + tn * h * 4
    vmem_limit = int(min(max(2 * (buffer_count * x_block_bytes + resident), 8 << 20),
                         48 << 20))

    # Deeper pipelining (e.g. buffer_count=3) mainly helps low-BW v5e; sweep 2 vs 3.
    x_spec_kwargs = {}
    if buffer_count != 2:
        x_spec_kwargs["pipeline_mode"] = pl.Buffered(buffer_count)
    x_spec = pl.BlockSpec((tn, ts, h), lambda i, j: (i, j, 0), **x_spec_kwargs)

    return pl.pallas_call(
        _classifier_kernel,
        out_shape=jax.ShapeDtypeStruct((n, c), jnp.float32),
        grid_spec=pltpu.PrefetchScalarGridSpec(
            num_scalar_prefetch=0,
            grid=(n // tn, s // ts),                         # S (reduction) innermost
            in_specs=[
                x_spec,
                pl.BlockSpec((h, c), lambda i, j: (0, 0)),   # constant idx -> resident
                pl.BlockSpec((1, c), lambda i, j: (0, 0)),   # constant idx -> resident
            ],
            out_specs=pl.BlockSpec((tn, c), lambda i, j: (i, 0)),  # const along S
            scratch_shapes=[pltpu.VMEM((tn, h), jnp.float32)],
        ),
        compiler_params=pltpu.CompilerParams(
            dimension_semantics=("parallel", "arbitrary"),
            vmem_limit_bytes=vmem_limit,
        ),
    )(x, w_scaled, b32)


# ----------------------------------------------------------------------------
# Reranker-specific tail (tiny: [N, C] -> scalar loss + [B, G] scores).
# Plain jnp/XLA — a dedicated grid=(1,) pallas_call here was pure launch overhead.
# ----------------------------------------------------------------------------
def reranker_loss_and_scores(logits, temperature, per_device_batch, group_size):
    scaled = logits / temperature if temperature is not None else logits
    scores = scaled[:, 1].reshape(per_device_batch, group_size)      # logits[:, 1]
    # CrossEntropyLoss(scores, zeros(B)) with mean reduction (stable logsumexp).
    lse = jax.nn.logsumexp(scores, axis=-1)
    loss = jnp.mean(lse - scores[:, 0])
    return loss, scores


# ----------------------------------------------------------------------------
# Reranker.forward (training path, non-collaborative)
# ----------------------------------------------------------------------------
def reranker_forward(x, w, b, *, per_device_batch, group_size, temperature,
                     tn=None, ts=None, buffer_count=2):
    logits = classifier_head(x, w, b, tn=tn, ts=ts, buffer_count=buffer_count)
    loss, scores = reranker_loss_and_scores(logits, temperature,
                                            per_device_batch, group_size)
    # As in the PyTorch module, the returned logits are the raw hf_model logits.
    return {"loss": loss, "logits": logits, "scores": scores}


if __name__ == "__main__":
    # Small deterministic config consistent with the module:
    #   per_device_train_batch_size B=2, train_group_size G=8, seq S=32,
    #   hidden H=128 (lane-aligned), num_labels C=2; bf16 activations.
    B, G, S, H, C = 2, 8, 32, 128, 2
    N = B * G
    temperature = 2.0

    key = jax.random.PRNGKey(0)
    kx, kw, kb = jax.random.split(key, 3)
    x = jax.random.normal(kx, (N, S, H), dtype=jnp.float32).astype(jnp.bfloat16)
    w = jax.random.normal(kw, (H, C), dtype=jnp.float32) * 0.1
    b = jax.random.normal(kb, (1, C), dtype=jnp.float32) * 0.1

    # Pure-JAX reference of the same forward pass (same bf16 -> f32 upcast of x).
    x32 = x.astype(jnp.float32)
    pooled = jnp.mean(x32, axis=1)
    ref_logits = pooled @ w + b
    ref_scores = (ref_logits / temperature)[:, 1].reshape(B, G)
    ref_loss = jnp.mean(jax.nn.logsumexp(ref_scores, axis=-1) - ref_scores[:, 0])

    # 1) Explicit small tiles: exercises both grid axes (2 N-blocks x 2 S-steps);
    #    both tile sizes are bf16 sublane-pack (16) aligned / 8-aligned.
    out = reranker_forward(x, w, b, per_device_batch=B, group_size=G,
                           temperature=temperature, tn=8, ts=16)
    jax.block_until_ready(out["loss"])
    assert jnp.allclose(out["logits"], ref_logits, atol=2e-3, rtol=2e-3)
    assert jnp.allclose(out["scores"], ref_scores, atol=2e-3, rtol=2e-3)
    assert jnp.allclose(out["loss"], ref_loss, atol=2e-3)

    # 2) Auto tile picker (TS-first, TN capped for >=2 N-blocks -> v7x megacore).
    out_auto = reranker_forward(x, w, b, per_device_batch=B, group_size=G,
                                temperature=temperature)
    jax.block_until_ready(out_auto["loss"])
    assert jnp.allclose(out_auto["logits"], ref_logits, atol=2e-3, rtol=2e-3)
    assert jnp.allclose(out_auto["loss"], ref_loss, atol=2e-3)

    print("KERNEL_OK")
</pallas_src>

<mosaic_0001>
module attributes {stable_mosaic.version = 11 : i64} {
  func.func @_classifier_kernel(%arg0: i32, %arg1: i32, %arg2: memref<8x16x128xbf16, #tpu.memory_space<vmem>>, %arg3: memref<128x2xf32, #tpu.memory_space<vmem>>, %arg4: memref<1x2xf32, #tpu.memory_space<vmem>>, %arg5: memref<8x2xf32, #tpu.memory_space<vmem>>, %arg6: memref<8x128xf32, #tpu.memory_space<vmem>>) attributes {dimension_semantics = [#tpu.dimension_semantics<parallel>, #tpu.dimension_semantics<arbitrary>], iteration_bounds = array<i64: 2, 2>, scalar_prefetch = 0 : i64, scratch_operands = 1 : i64, tpu.core_type = #tpu.core_type<tc>, window_params = [{transform_indices = @transform_0, window_bounds = array<i64: 8, 16, 128>}, {pipeline_mode = #tpu.pipeline_mode<synchronous>, transform_indices = @transform_1, window_bounds = array<i64: 128, 2>}, {pipeline_mode = #tpu.pipeline_mode<synchronous>, transform_indices = @transform_2, window_bounds = array<i64: 1, 2>}, {transform_indices = @transform_3, window_bounds = array<i64: 8, 2>}]} {
    %c0_i32 = arith.constant 0 : i32
    %0 = arith.cmpi eq, %arg1, %c0_i32 : i32
    %1 = arith.extui %0 : i1 to i32
    %c0_i32_0 = arith.constant 0 : i32
    %2 = arith.cmpi ne, %1, %c0_i32_0 : i32
    scf.if %2 {
      %cst_8 = arith.constant 0.000000e+00 : f32
      %12 = vector.broadcast %cst_8 : f32 to vector<8x128xf32>
      %c0_9 = arith.constant 0 : index
      %c0_10 = arith.constant 0 : index
      %13 = vector.load %arg6[%c0_9, %c0_10] : memref<8x128xf32, #tpu.memory_space<vmem>>, vector<8x128xf32>
      tpu.vector_store %arg6[%c0_9, %c0_10], %12 {strides = array<i32>} : memref<8x128xf32, #tpu.memory_space<vmem>>, vector<8x128xf32>,
    } else {
    }
    %c0 = arith.constant 0 : index
    %c0_1 = arith.constant 0 : index
    %3 = vector.load %arg6[%c0, %c0_1] : memref<8x128xf32, #tpu.memory_space<vmem>>, vector<8x128xf32>
    %c0_2 = arith.constant 0 : index
    %c0_3 = arith.constant 0 : index
    %c0_4 = arith.constant 0 : index
    %4 = vector.load %arg2[%c0_2, %c0_3, %c0_4] : memref<8x16x128xbf16, #tpu.memory_space<vmem>>, vector<8x16x128xbf16>
    %5 = arith.extf %4 : vector<8x16x128xbf16> to vector<8x16x128xf32>
    %cst = arith.constant dense<0.000000e+00> : vector<8x128xf32>
    %6 = vector.multi_reduction <add>, %5, %cst [1] : vector<8x16x128xf32> to vector<8x128xf32>
    %7 = arith.addf %3, %6 : vector<8x128xf32>
    %c0_5 = arith.constant 0 : index
    %c0_6 = arith.constant 0 : index
    %8 = vector.load %arg6[%c0_5, %c0_6] : memref<8x128xf32, #tpu.memory_space<vmem>>, vector<8x128xf32>
    tpu.vector_store %arg6[%c0_5, %c0_6], %7 {strides = array<i32>} : memref<8x128xf32, #tpu.memory_space<vmem>>, vector<8x128xf32>,
    %c1_i32 = arith.constant 1 : i32
    %9 = arith.cmpi eq, %arg1, %c1_i32 : i32
    %10 = arith.extui %9 : i1 to i32
    %c0_i32_7 = arith.constant 0 : i32
    %11 = arith.cmpi ne, %10, %c0_i32_7 : i32
    scf.if %11 {
      %c0_8 = arith.constant 0 : index
      %c0_9 = arith.constant 0 : index
      %12 = vector.load %arg6[%c0_8, %c0_9] : memref<8x128xf32, #tpu.memory_space<vmem>>, vector<8x128xf32>
      %c0_10 = arith.constant 0 : index
      %c0_11 = arith.constant 0 : index
      %13 = vector.load %arg3[%c0_10, %c0_11] : memref<128x2xf32, #tpu.memory_space<vmem>>, vector<128x2xf32>
      %cst_12 = arith.constant dense<0.000000e+00> : vector<8x2xf32>
      %14 = tpu.matmul %12, %13, %cst_12 {dimension_numbers = #tpu.dot_dimension_numbers<[1], [0], [0], [1], [0, 0, 1, 1], [], []>} : vector<8x128xf32>, vector<128x2xf32>, vector<8x2xf32> -> vector<8x2xf32>
      %c0_13 = arith.constant 0 : index
      %c0_14 = arith.constant 0 : index
      %15 = vector.load %arg4[%c0_13, %c0_14] : memref<1x2xf32, #tpu.memory_space<vmem>>, vector<1x2xf32>
      %16 = vector.broadcast %15 : vector<1x2xf32> to vector<8x2xf32>
      %17 = arith.addf %14, %16 : vector<8x2xf32>
      %c0_15 = arith.constant 0 : index
      %c0_16 = arith.constant 0 : index
      %18 = vector.load %arg5[%c0_15, %c0_16] : memref<8x2xf32, #tpu.memory_space<vmem>>, vector<8x2xf32>
      tpu.vector_store %arg5[%c0_15, %c0_16], %17 {strides = array<i32>} : memref<8x2xf32, #tpu.memory_space<vmem>>, vector<8x2xf32>,
    } else {
    }
    return
  }
  func.func @transform_0(%arg0: i32, %arg1: i32) -> (i32, i32, i32) {
    %c0_i32 = arith.constant 0 : i32
    %c0_i32_0 = arith.constant 0 : i32
    return %arg0, %arg1, %c0_i32 : i32, i32, i32
  }
  func.func @transform_1(%arg0: i32, %arg1: i32) -> (i32, i32) {
    %c0_i32 = arith.constant 0 : i32
    %c0_i32_0 = arith.constant 0 : i32
    %c0_i32_1 = arith.constant 0 : i32
    return %c0_i32, %c0_i32_0 : i32, i32
  }
  func.func @transform_2(%arg0: i32, %arg1: i32) -> (i32, i32) {
    %c0_i32 = arith.constant 0 : i32
    %c0_i32_0 = arith.constant 0 : i32
    %c0_i32_1 = arith.constant 0 : i32
    return %c0_i32, %c0_i32_0 : i32, i32
  }
  func.func @transform_3(%arg0: i32, %arg1: i32) -> (i32, i32) {
    %c0_i32 = arith.constant 0 : i32
    %c0_i32_0 = arith.constant 0 : i32
    return %arg0, %c0_i32 : i32, i32
  }
}

</mosaic_0001>

<bundles_post_ra>
// kernel: tpu_custom_call.1
= control target key start
LH: loop header
LB: loop body
LE: loop exit
PB: predicated region body
PF: predicated region fallthrough
CT: control target
= control target key end

     0   :  { %8 = vsyncpa [#allocation4], 0  ;;  %s1030_s0 = inlined_call_operand.hbm [shape: bf16[16,32,128], index: 0, kind: input, shape index: {}]   ;;  %s1031_s1 = inlined_call_operand.vmem [shape: f32[128,2], index: 1, kind: input, shape index: {}]   ;;  %s1032_s2 = inlined_call_operand.vmem [shape: f32[1,2], index: 2, kind: input, shape index: {}]   ;;  %s1033_s3 = inlined_call_operand.vmem [shape: f32[16,2], index: 3, kind: output, shape index: {}]  }
   0x1   :  { %10 = vsyncpa [#allocation4 + $0x1], 0  ;;  %s847_s12 = smov 0   ;;  %s849_s13 = smov 0  }
   0x2   :  { %s851_s14 = smov 0   ;;  %s853_s15 = smov 0  }
   0x3   :  { %s855_s16 = smov 0   ;;  %s857_s17 = smov 0  }
   0x4   :  { %s859_s18 = smov 0   ;;  %s861_s19 = smov 0  }
   0x5 LB: > { %s25_s20 = sadd.s32 1, %s807_s17  ;;  %s28_s21 = sadd.s32 1, %s811_s18  ;;  %s815_s19 = sphi %s861_s19, %s16_s19   ;;  %s811_s18 = sphi %s859_s18, %s1042_s18   ;;  %s807_s17 = sphi %s857_s17, %s1041_s17   ;;  %s803_s16 = sphi %s855_s16, %s1040_s16   ;;  %s799_s15 = sphi %s853_s15, %s1039_s15   ;;  %s795_s14 = sphi %s851_s14, %s1038_s14   ;;  %s791_s13 = sphi %s849_s13, %s1037_s13   ;;  %s787_s12 = sphi %s847_s12, %s1036_s12  }
   0x6   : > { %p26_p0 = scmp.ge.s32.totalorder %s25_s20, 2  ;;  %s531_s22 = sadd.s32 4294967295, %s815_s19  }
   0x7   : > { %p44_p1 = scmp.ne.s32.totalorder %s795_s14, %s791_s13  ;;  %p45_p2 = scmp.eq.s32.totalorder %s815_s19, 0 }
   0x8   : > { %s1044_s20 = smov (%p26_p0, %s25_s20), 0  ;;  %s1046_s21 = smov (!%p26_p0, %s28_s21), %s811_s18 }
   0x9   : > { %s33_s23 = ssub.s32 %s807_s17, %s1044_s20  ;;  %p30_p3 = scmp.ge.s32.totalorder %s1046_s21, 2 }
   0xa   : > { %p50_p4 = scmp.ne.s32.totalorder %s791_s13, %s787_s12  ;;  %p897_p5 = por %p45_p2, %p44_p1 }
   0xb   : > { %p51_p6 = scmp.eq.s32.totalorder %s531_s22, 0  ;;  %s1048_s21 = smov (%p30_p3, %s1046_s21), 0 }
   0xc   : > { %s32_s26 = ssub.s32 %s811_s18, %s1048_s21  ;;  %s37_s28 = sadd.s32 1, %s795_s14 }
   0xd   : > { %p903_p7 = por %p51_p6, %p50_p4  ;;  %s34_s27 = sor.u32 %s33_s23, %s32_s26 }
   0xe   : > { %p35_p8 = scmp.eq.s32.totalorder %s34_s27, 0  ;;  %p534_p9 = scmp.ge.s32.totalorder %s815_s19, 4 }
  0x10   : > { %s911_s29 = scalar_select %p35_p8, %s795_s14, %s37_s28  }
  0x11   : > { %144 = sbr.rel (%p534_p9) target bundleno = 40 (0x28), region = 24 }
  0x18   : > { %s148_s30 = sand.u32 1, %s795_s14   ;;  %s537_s4 = sshll.u32 %s807_s17, 1 }
  0x19   : > { %s535_s5 = sshll.u32 %s148_s30, 6  ;;  %s550_s6 = sshll.u32 %s811_s18, 5 }
  0x1a   : > { %s159_s7 = sadd.s32 %s550_s6, %s537_s4  ;;  %s152_s8 = scalar_lea.vmem [#allocation3], %s535_s5 }
  0x1b   : > { %s174_s9 = sshll.u32 %s152_s8, 4  ;;  %s539_s10 = sshll.u32 %s159_s7, 6  ;;  %s175_s9 = int_to_ptr.vmem [resolvable:$true] %s174_s9 }
  0x1c   : > { %s666_s11 = scalar_select %p897_p5, [#allocation0], [#allocation7] }
  0x1d   : > { %s817_s12 = smov 256   ;;  %s818_s23 = smov 128  }
  0x1e   : > { %667 = sst [smem:[#allocation6]] (%p897_p5), %s817_s12  ;;  %s819_s26 = smov 2  }
  0x1f   : > { %s166_s22 = sld [smem:[%s666_s11]]   ;;  %s820_s27 = smov 64  }
  0x20   : > { %668 = sst [smem:[#allocation6 + $0x1]] (%p897_p5), %s818_s23  ;;  %s161_s5 = scalar_lea.hbm %s1030_s0, %s539_s10 }
  0x21   : > { %669 = sst [smem:[#allocation6 + $0x2]] (%p897_p5), %s819_s26  ;;  %s821_s6 = smov 4  }
  0x22   : > { %670 = sst [smem:[#allocation6 + $0x3]] (%p897_p5), %s820_s27  ;;  %s149_s11 = scalar_lea.sflag [#allocation4], %s148_s30 }
  0x23   : > { %671 = sst [smem:[#allocation6 + $0x4]] (%p897_p5), %s820_s27  ;;  %s822_s12 = smov [#allocation5]  }
  0x24   : > { %672 = sst [smem:[#allocation6 + $0x5]] (%p897_p5), %s821_s6 }
  0x25   : > { %s540_s7 = sshll.u32 %s166_s22, 26 }
  0x26   : > { %s541_s8 = sadd.s32 134217728, %s540_s7 }
  0x27   : > { %673 = dma.general (%p897_p5), %s161_s5, 1024, %s175_s9, %s149_s11, %s822_s12, [#allocation6], %s541_s8, 0  }
  0x28 PF: > { %p542_p10 = scmp.ge.s32.totalorder %s815_s19, 1  ;;  %p195_p11 = scmp.lt.s32.totalorder %s815_s19, 5 }
  0x2a   : > { %p196_p12 = pnand %p542_p10, %p195_p11 }
  0x2b   : > { %s201_s10 = sand.u32 (!%p196_p12), 1, %s791_s13  }
  0x2c   : > { %199 = sbr.rel (%p196_p12) target bundleno = 329 (0x149), region = 32  ;;  %s543_s23 = sshll.u32 (!%p196_p12), %s201_s10, 6 }
  0x2d   : > { %s202_s26 = scalar_lea.sflag (!%p196_p12), [#allocation4], %s201_s10  ;;  %s205_s27 = scalar_lea.vmem (!%p196_p12), [#allocation3], %s543_s23 }
  0x33   : > { %782 = dma.done.wait (%p903_p7), %s202_s26, 1024  }
  0x34   : > { %784 = vsyncadd (%p903_p7), %s202_s26, 4294966272  ;;  %p229_p13 = scmp.lt.s32.totalorder %s803_s16, 1  ;;  %p545_p0 = scmp.ne.s32.totalorder %s799_s15, 0 }
  0x35   : > { %v823_v0 = vmov (!%p545_p0), 0.0  }
  0x36   : > { %s1050_s16 = smov (!%p229_p13, %s803_s16), 1  ;;  %236 = sbr.rel (%p545_p0) target bundleno = 61 (0x3d), region = 40 }
  0x37   : > { %s544_s24 = sshll.u32 %s1050_s16, 3  ;;  %237 = vst [vmem:[#allocation2] sm:$0xff] (!%p545_p0), %v823_v0 }
  0x38   : > { %s948_s22 = scalar_lea.vmem %s1033_s3, %s544_s24 }
  0x3d PF: > { %v552_v1 = vld [vmem:[%s205_s27] sm:$0xff]   ;;  %v583_v2 = vld [vmem:[%s205_s27 + $0x8] sm:$0xff]   ;;  %v584_v7 = vld [vmem:[%s205_s27 + $0x10] sm:$0xff]   ;;  %vm335_vm0 = vcmask 1041409   ;;  %vm337_vm1 = vcmask 1042434   ;;  %vm339_vm2 = vcmask 1043459  }
  0x3e   : > { %v553_v3 = vunpack.c.l.bf16 %v552_v1  ;;  %v554_v4 = vunpack.c.h.bf16 %v552_v1  ;;  %v557_v5 = vunpack.c.l.bf16 %v583_v2  ;;  %v558_v6 = vunpack.c.h.bf16 %v583_v2  ;;  %v585_v8 = vld [vmem:[%s205_s27 + $0x18] sm:$0xff]   ;;  %v586_v9 = vld [vmem:[%s205_s27 + $0x20] sm:$0xff]   ;;  %v587_v14 = vld [vmem:[%s205_s27 + $0x28] sm:$0xff]   ;;  %p546_p1 = scmp.ne.s32.totalorder %s799_s15, 1 }
  0x3f   : > { %v561_v10 = vunpack.c.l.bf16 %v584_v7  ;;  %v562_v11 = vunpack.c.h.bf16 %v584_v7  ;;  %v565_v12 = vunpack.c.l.bf16 %v585_v8  ;;  %v566_v13 = vunpack.c.h.bf16 %v585_v8  ;;  %v588_v15 = vld [vmem:[%s205_s27 + $0x30] sm:$0xff]   ;;  %v589_v16 = vld [vmem:[%s205_s27 + $0x38] sm:$0xff]  }
  0x40   : > { %v569_v17 = vunpack.c.l.bf16 %v586_v9  ;;  %v570_v18 = vunpack.c.h.bf16 %v586_v9  ;;  %v573_v19 = vunpack.c.l.bf16 %v587_v14  ;;  %v574_v20 = vunpack.c.h.bf16 %v587_v14 }
  0x41   : > { %v577_v21 = vunpack.c.l.bf16 %v588_v15  ;;  %v578_v22 = vunpack.c.h.bf16 %v588_v15  ;;  %v581_v23 = vunpack.c.l.bf16 %v589_v16  ;;  %v582_v24 = vunpack.c.h.bf16 %v589_v16 }
  0x42   : > { %v271_v25 = vadd.f32 %v554_v4, %v553_v3  ;;  %v278_v26 = vadd.f32 %v558_v6, %v557_v5  ;;  %v285_v27 = vadd.f32 %v562_v11, %v561_v10  ;;  %v292_v28 = vadd.f32 %v566_v13, %v565_v12 }
  0x43   : > { %v299_v29 = vadd.f32 %v570_v18, %v569_v17  ;;  %v306_v30 = vadd.f32 %v574_v20, %v573_v19  ;;  %v313_v31 = vadd.f32 %v578_v22, %v577_v21  ;;  %v320_v32 = vadd.f32 %v582_v24, %v581_v23  ;;  %v238_v21 = vld [vmem:[#allocation2] sm:$0xff] }
  0x44   : > { %v272_v33 = vrot.slane %v271_v25, 4  ;;  %v279_v34 = vrot.slane %v278_v26, 4  ;;  %v286_v35 = vrot.slane %v285_v27, 4  ;;  %v293_v36 = vrot.slane %v292_v28, 4 }
  0x45   : > { %v300_v37 = vrot.slane %v299_v29, 4  ;;  %v307_v38 = vrot.slane %v306_v30, 4  ;;  %v314_v39 = vrot.slane %v313_v31, 4  ;;  %v321_v40 = vrot.slane %v320_v32, 4 }
  0x46   : > { %v273_v41 = vadd.f32 %v272_v33, %v271_v25  ;;  %v280_v42 = vadd.f32 %v279_v34, %v278_v26  ;;  %v287_v43 = vadd.f32 %v286_v35, %v285_v27  ;;  %v294_v44 = vadd.f32 %v293_v36, %v292_v28  ;;  %v357_v26 = vld [vmem:[%s1031_s1] sm:$0xff] (!%p546_p1)  ;;  %v358_v27 = vld [vmem:[%s1031_s1 + $0x8] sm:$0xff] (!%p546_p1)  ;;  %v359_v28 = vld [vmem:[%s1031_s1 + $0x10] sm:$0xff] (!%p546_p1) }
  0x47   : > { %v301_v45 = vadd.f32 %v300_v37, %v299_v29  ;;  %v308_v46 = vadd.f32 %v307_v38, %v306_v30  ;;  %v315_v47 = vadd.f32 %v314_v39, %v313_v31  ;;  %v322_v48 = vadd.f32 %v321_v40, %v320_v32  ;;  %v360_v31 = vld [vmem:[%s1031_s1 + $0x18] sm:$0xff] (!%p546_p1)  ;;  %v361_v34 = vld [vmem:[%s1031_s1 + $0x20] sm:$0xff] (!%p546_p1)  ;;  %v362_v35 = vld [vmem:[%s1031_s1 + $0x28] sm:$0xff] (!%p546_p1) }
  0x48   : > { %v274_v49 = vrot.slane %v273_v41, 2  ;;  %v281_v50 = vrot.slane %v280_v42, 2  ;;  %v288_v51 = vrot.slane %v287_v43, 2  ;;  %v295_v52 = vrot.slane %v294_v44, 2  ;;  %v363_v37 = vld [vmem:[%s1031_s1 + $0x30] sm:$0xff] (!%p546_p1)  ;;  %v364_v38 = vld [vmem:[%s1031_s1 + $0x38] sm:$0xff] (!%p546_p1) }
  0x49   : > { %v302_v53 = vrot.slane %v301_v45, 2  ;;  %v309_v54 = vrot.slane %v308_v46, 2  ;;  %v316_v55 = vrot.slane %v315_v47, 2  ;;  %v323_v56 = vrot.slane %v322_v48, 2  ;;  %v365_v40 = vld [vmem:[%s1031_s1 + $0x40] sm:$0xff] (!%p546_p1) }
  0x4a   : > { %v275_v57 = vadd.f32 %v274_v49, %v273_v41  ;;  %v282_v58 = vadd.f32 %v281_v50, %v280_v42  ;;  %v289_v59 = vadd.f32 %v288_v51, %v287_v43  ;;  %v296_v60 = vadd.f32 %v295_v52, %v294_v44  ;;  %v366_v41 = vld [vmem:[%s1031_s1 + $0x48] sm:$0xff] (!%p546_p1)  ;;  %v367_v43 = vld [vmem:[%s1031_s1 + $0x50] sm:$0xff] (!%p546_p1)  ;;  %v368_v44 = vld [vmem:[%s1031_s1 + $0x58] sm:$0xff] (!%p546_p1) }
  0x4b   : > { %v303_v61 = vadd.f32 %v302_v53, %v301_v45  ;;  %v310_v62 = vadd.f32 %v309_v54, %v308_v46  ;;  %v317_v63 = vadd.f32 %v316_v55, %v315_v47  ;;  %v324_v0 = vadd.f32 %v323_v56, %v322_v48  ;;  %v369_v46 = vld [vmem:[%s1031_s1 + $0x60] sm:$0xff] (!%p546_p1)  ;;  %v370_v47 = vld [vmem:[%s1031_s1 + $0x68] sm:$0xff] (!%p546_p1)  ;;  %v371_v49 = vld [vmem:[%s1031_s1 + $0x70] sm:$0xff] (!%p546_p1) }
  0x4c   : > { %v276_v1 = vrot.slane %v275_v57, 1  ;;  %v283_v2 = vrot.slane %v282_v58, 1  ;;  %v290_v3 = vrot.slane %v289_v59, 1  ;;  %v297_v4 = vrot.slane %v296_v60, 1  ;;  %v372_v50 = vld [vmem:[%s1031_s1 + $0x78] sm:$0xff] (!%p546_p1) }
  0x4d   : > { %v304_v5 = vrot.slane %v303_v61, 1  ;;  %v311_v6 = vrot.slane %v310_v62, 1  ;;  %v318_v7 = vrot.slane %v317_v63, 1  ;;  %v325_v8 = vrot.slane %v324_v0, 1  ;;  %v547_v53 = vld [vmem:[%s1032_s2] ss:$0 sm:$0xff] (!%p546_p1) }
  0x4e   : > { %v277_v9 = vadd.f32 %v276_v1, %v275_v57  ;;  %v284_v10 = vadd.f32 %v283_v2, %v282_v58  ;;  %v291_v11 = vadd.f32 %v290_v3, %v289_v59  ;;  %v298_v12 = vadd.f32 %v297_v4, %v296_v60 }
  0x4f   : > { %v305_v13 = vadd.f32 %v304_v5, %v303_v61  ;;  %v312_v14 = vadd.f32 %v311_v6, %v310_v62  ;;  %vm341_vm3 = vcmask 1044484   ;;  %v319_v16 = vadd.f32 %v318_v7, %v317_v63 }
  0x50   : > { %v336_v15 = vsel %vm335_vm0, %v284_v10, %v277_v9  ;;  %vm343_vm4 = vcmask 1045509   ;;  %v326_v18 = vadd.f32 %v325_v8, %v324_v0  ;;  %vm345_vm5 = vcmask 1046534  }
  0x51   : > { %v338_v17 = vsel %vm337_vm1, %v291_v11, %v336_v15  ;;  %vm347_vm6 = vcmask 1047559   ;;  %v824_v29 = vmov (!%p546_p1), 0.0|0.0   ;;  %v643_v30 = vpack.c.bf16 (!%p546_p1), %v358_v27, %v357_v26 }
  0x52   : > { %v340_v19 = vsel %vm339_vm2, %v298_v12, %v338_v17  ;;  %642 = vmatprep.subr.bf16.mxu0 (!%p546_p1), %v824_v29  ;;  %vm825_vm7 = vmmov (!%p546_p1), 0   ;;  %v826_v32 = vmov (!%p546_p1), 0.0   ;;  %v646_v33 = vpack.c.bf16 (!%p546_p1), %v360_v31, %v359_v28 }
  0x53   : > { %v342_v20 = vsel %vm341_vm3, %v305_v13, %v340_v19  ;;  %355 = sbr.rel (%p546_p1) target bundleno = 329 (0x149), region = 44  ;;  %639 = vmatprep.mubr.msk.f32.mxu0 (!%p546_p1), %vm825_vm7, %v826_v32  ;;  %644 = vmatpush3.bf16.msra.mxu0 (!%p546_p1), %v643_v30  ;;  %v649_v36 = vpack.c.bf16 (!%p546_p1), %v362_v35, %v361_v34  ;;  %v652_v39 = vpack.c.bf16 (!%p546_p1), %v364_v38, %v363_v37  ;;  %vm450_vm8 = vcmask (!%p546_p1), 15360  }
  0x54   : > { %v344_v22 = vsel %vm343_vm4, %v312_v14, %v342_v20  ;;  %645 = vmatprep.subr.bf16.mxu0 (!%p546_p1), %v824_v29  ;;  %v655_v42 = vpack.c.bf16 (!%p546_p1), %v366_v41, %v365_v40  ;;  %v658_v45 = vpack.c.bf16 (!%p546_p1), %v368_v44, %v367_v43  ;;  %v661_v48 = vpack.c.bf16 (!%p546_p1), %v370_v47, %v369_v46 }
  0x55   : > { %v346_v23 = vsel %vm345_vm5, %v319_v16, %v344_v22  ;;  %v664_v51 = vpack.c.bf16 (!%p546_p1), %v372_v50, %v371_v49 }
  0x56   : > { %v348_v24 = vsel %vm347_vm6, %v326_v18, %v346_v23 }
  0x57   : > { %v350_v25 = vadd.f32 %v348_v24, %v238_v21  ;;  %647 = vmatpush3.bf16.msra.mxu0 (!%p546_p1), %v646_v33 }
  0x58   : > { %648 = vmatprep.subr.bf16.mxu0 (!%p546_p1), %v824_v29 }
  0x59   : > { %351 = vst [vmem:[#allocation2] sm:$0xff] %v350_v25 }
  0x5b   : > { %650 = vmatpush3.bf16.msra.mxu0 %v649_v36 }
  0x5c   : > { %651 = vmatprep.subr.bf16.mxu0 %v824_v29 }
  0x5f   : > { %653 = vmatpush3.bf16.msra.mxu0 %v652_v39 }
  0x60   : > { %654 = vmatprep.subr.bf16.mxu0 %v824_v29  ;;  %v356_v52 = vld [vmem:[#allocation2] sm:$0xff] }
  0x63   : > { %656 = vmatpush3.bf16.msra.mxu0 %v655_v42 }
  0x64   : > { %657 = vmatprep.subr.bf16.mxu0 %v824_v29 }
  0x67   : > { %659 = vmatpush3.bf16.msra.mxu0 %v658_v45 }
  0x68   : > { %660 = vmatprep.subr.bf16.mxu0 %v824_v29 }
  0x6b   : > { %662 = vmatpush3.bf16.msra.mxu0 %v661_v48 }
  0x6c   : > { %663 = vmatprep.subr.bf16.mxu0 %v824_v29 }
  0x6f   : > { %665 = vmatpush3.bf16.msra.mxu0 %v664_v51 }
  0x72   : > { %640 = vmatmul.mubr.f32.vlgmr.msra.gmra.mrb[0].mxu0 %v356_v52 }
 0x145   : > { %v446_v54 = vpop.f32.mrb[0].mxu0 }
 0x146   : > { %v447_v55 = vadd.f32 %v547_v53, %v446_v54  ;;  %v641_v56 = vpop.f32.mrb[1].mxu0 }
 0x148   : > { %451 = vst.msk [vmem:[%s948_s22] sm:$0xff] %vm450_vm8, %v447_v55 }
 0x149 PF: > { %s16_s19 = sadd.s32 1, %s815_s19   ;;  %s1036_s12 = smov %s791_s13 }
 0x14a   : > { %p13_p2 = scmp.ge.s32.totalorder %s16_s19, 6   ;;  %s1037_s13 = smov %s795_s14 }
 0x14b   : > { %s1038_s14 = smov %s911_s29  ;;  %s1039_s15 = smov %s807_s17 }
 0x14c   : > { %s1040_s16 = smov %s811_s18  ;;  %s1041_s17 = smov %s1044_s20 }
 0x14d   : > { %s1042_s18 = smov %s1048_s21  ;;  %15 = sbr.rel (!%p13_p2) target bundleno = 5 (0x5), region = 85 }
 0x154   :  { %471 = vsyncpa [#allocation4], 1 }
 0x155   :  { %473 = vsyncpa [#allocation4 + $0x1], 1 }

</bundles_post_ra>
